<compile_context>
chip_gen: v7x
topology: tpu7x:2x2x1
jax: 0.10.0
libtpu: 0.0.40
codegen_flags: <defaults>
</compile_context>

<pallas_src>
import functools

import jax
import jax.numpy as jnp
from jax import lax
from jax.experimental import pallas as pl
from jax.experimental.pallas import tpu as pltpu

_NEG_SLOPE = 0.2   # LeakyReLU slope from DeConv
_PN_EPS = 1e-8     # PixelNorm eps


def _make_deconv_kernel(cout_real):
    inv_cout = 1.0 / float(cout_real)

    def kernel(patches_ref, w_ref, b_ref, out_ref):
        # patches_ref: (tm, K)        bf16  im2col tile of the (unscaled) input
        # w_ref:       (K, Cout_pad)  bf16  scale-folded weights (zero-padded channels)
        # b_ref:       (1, Cout_pad)  f32   zero-padded bias
        # out_ref:     (tm, Cout_pad) f32
        y = jnp.dot(patches_ref[...], w_ref[...],
                    preferred_element_type=jnp.float32)      # conv as matmul (MXU, f32 acc)
        y = y + b_ref[...]                                   # bias
        y = jnp.maximum(y, _NEG_SLOPE * y)                   # LeakyReLU(0.2)
        # PixelNorm over the real channels. Padded channels are exactly zero (zero
        # weight columns + zero bias), so they don't perturb the sum; divide by the
        # real Cout, not Cout_pad.
        ssq = jnp.sum(y * y, axis=-1, keepdims=True)
        y = y * lax.rsqrt(ssq * inv_cout + _PN_EPS)
        out_ref[...] = y.astype(out_ref.dtype)

    return kernel


def _im2col_bf16(x_nchw, kh, kw, stride, padding):
    """Extract conv patches in bf16. Returns ([M, K] patches, (N, Ho, Wo))."""
    N, C, H, W = x_nchw.shape
    xp = jnp.pad(x_nchw.astype(jnp.bfloat16),
                 ((0, 0), (0, 0), (padding, padding), (padding, padding)))
    Ho = (H + 2 * padding - kh) // stride + 1
    Wo = (W + 2 * padding - kw) // stride + 1
    cols = []
    for i in range(kh):
        for j in range(kw):
            cols.append(xp[:, :, i:i + (Ho - 1) * stride + 1:stride,
                               j:j + (Wo - 1) * stride + 1:stride])
    # [N, C, Ho, Wo, kh*kw] -> [N, Ho, Wo, kh*kw, C] -> [M, K]
    p = jnp.stack(cols, axis=-1).transpose(0, 2, 3, 4, 1)
    return p.reshape(N * Ho * Wo, kh * kw * C), (N, Ho, Wo)


def _pick_tile_m(M, K, cout_pad):
    """Largest M tile that fits a conservative VMEM budget, keeping >= 2 grid steps
    when M allows so the 'parallel' axis can shard across v7x's two TensorCores."""
    resident = K * cout_pad * 2 + cout_pad * 4                 # bf16 weights + f32 bias
    budget = 30 * 1024 * 1024
    for tm in (1024, 512, 256, 128, 64, 32, 16, 8):
        need = resident + 2 * tm * K * 2 + 2 * tm * cout_pad * 4   # double-buffered in/out
        if need > budget:
            continue
        if M > tm or tm == 8:
            return tm
    return 8


@functools.partial(jax.jit, static_argnames=("kernel_size", "stride", "padding"))
def deconv_forward(x, weight, bias, scale, *, kernel_size, stride, padding):
    """PGGAN DeConv forward.  x: [N, Cin, H, W] NCHW -> [N, Cout, Ho, Wo] NCHW."""
    kh = kw = kernel_size
    cout = weight.shape[0]

    patches, (N, Ho, Wo) = _im2col_bf16(x, kh, kw, stride, padding)
    M, K = patches.shape

    cout_pad = max(128, pl.cdiv(cout, 128) * 128)

    # Fold the equalized-lr scale into the weights: (x*s) @ W == x @ (s*W).
    w_mat = weight.astype(jnp.float32) * jnp.asarray(scale, jnp.float32)
    w_mat = w_mat.transpose(2, 3, 1, 0).reshape(K, cout)            # [K, Cout]
    w_mat = jnp.pad(w_mat, ((0, 0), (0, cout_pad - cout))).astype(jnp.bfloat16)
    b_mat = jnp.pad(bias.astype(jnp.float32).reshape(1, cout),
                    ((0, 0), (0, cout_pad - cout)))

    tm = _pick_tile_m(M, K, cout_pad)
    M_pad = pl.cdiv(M, tm) * tm
    if M_pad != M:
        patches = jnp.pad(patches, ((0, M_pad - M), (0, 0)))

    out = pl.pallas_call(
        _make_deconv_kernel(cout),
        out_shape=jax.ShapeDtypeStruct((M_pad, cout_pad), jnp.float32),
        grid=(M_pad // tm,),
        in_specs=[
            pl.BlockSpec((tm, K), lambda i: (i, 0)),            # patches tile (bf16)
            pl.BlockSpec((K, cout_pad), lambda i: (0, 0)),      # resident weights (bf16)
            pl.BlockSpec((1, cout_pad), lambda i: (0, 0)),      # bias (f32)
        ],
        out_specs=pl.BlockSpec((tm, cout_pad), lambda i: (i, 0)),
        compiler_params=pltpu.CompilerParams(
            dimension_semantics=("parallel",),
            vmem_limit_bytes=44 * 1024 * 1024),
    )(patches, w_mat, b_mat)

    out = out[:M, :cout].reshape(N, Ho, Wo, cout).transpose(0, 3, 1, 2)  # -> NCHW
    # TODO(synk): NCHW return kept for PyTorch layout parity (a NHWC consumer should drop
    # the transpose); eliminating the HBM-materialized im2col entirely (shifted-window
    # accumulation via manual DMA) is the next structural step.
    return out


def init_equalized_conv2d(key, ch_in, ch_out, kernel_size):
    """Deterministic re-implementation of EqualizedConv2d.__init__ parameter setup."""
    fan_in = ch_in * kernel_size * kernel_size
    # kaiming_normal_ with gain('conv2d') == 1  ->  std = 1/sqrt(fan_in)
    w0 = jax.random.normal(key, (ch_out, ch_in, kernel_size, kernel_size),
                           dtype=jnp.float32) / jnp.sqrt(jnp.float32(fan_in))
    scale = jnp.sqrt(jnp.mean(w0 ** 2))
    weight = w0 / scale                       # weight stored pre-divided by scale
    bias = jnp.zeros((ch_out,), jnp.float32)  # zero-init bias parameter
    return weight, bias, scale


if __name__ == "__main__":
    key = jax.random.PRNGKey(0)
    k_w, k_b, k_x = jax.random.split(key, 3)

    N, Cin, H, W = 2, 4, 16, 16
    Cout, ksize, stride, padding = 8, 3, 1, 1

    weight, bias, scale = init_equalized_conv2d(k_w, Cin, Cout, ksize)
    # Nonzero bias so the fused bias path is actually exercised.
    bias = 0.1 * jax.random.normal(k_b, (Cout,), dtype=jnp.float32)
    x = jax.random.normal(k_x, (N, Cin, H, W), dtype=jnp.float32)

    y = deconv_forward(x, weight, bias, scale,
                       kernel_size=ksize, stride=stride, padding=padding)
    y = jax.block_until_ready(y)

    # Reference: f32 XLA conv -> bias -> LeakyReLU(0.2) -> PixelNorm (PyTorch order).
    conv = lax.conv_general_dilated(
        x * scale, weight, window_strides=(stride, stride),
        padding=[(padding, padding), (padding, padding)],
        dimension_numbers=("NCHW", "OIHW", "NCHW"),
    ) + bias.reshape(1, -1, 1, 1)
    act = jnp.maximum(conv, 0.2 * conv)
    y_ref = act / jnp.sqrt(jnp.mean(act ** 2, axis=1, keepdims=True) + 1e-8)

    assert y.shape == (N, Cout, H, W), y.shape
    # bf16 patches/weights with f32 accumulation vs. the f32 reference -> relaxed tol.
    err = float(jnp.max(jnp.abs(y - y_ref)))
    assert jnp.allclose(y, y_ref, atol=5e-2, rtol=5e-2), err

    print("KERNEL_OK")
</pallas_src>

<mosaic_0001>
module attributes {stable_mosaic.version = 11 : i64} {
  func.func @kernel(%arg0: i32, %arg1: memref<256x36xbf16, #tpu.memory_space<vmem>>, %arg2: memref<36x128xbf16, #tpu.memory_space<vmem>>, %arg3: memref<1x128xf32, #tpu.memory_space<vmem>>, %arg4: memref<256x128xf32, #tpu.memory_space<vmem>>) attributes {dimension_semantics = [#tpu.dimension_semantics<parallel>], iteration_bounds = array<i64: 2>, scalar_prefetch = 0 : i64, scratch_operands = 0 : i64, tpu.core_type = #tpu.core_type<tc>, window_params = [{transform_indices = @transform_0, window_bounds = array<i64: 256, 36>}, {pipeline_mode = #tpu.pipeline_mode<synchronous>, transform_indices = @transform_1, window_bounds = array<i64: 36, 128>}, {pipeline_mode = #tpu.pipeline_mode<synchronous>, transform_indices = @transform_2, window_bounds = array<i64: 1, 128>}, {transform_indices = @transform_3, window_bounds = array<i64: 256, 128>}]} {
    %c0 = arith.constant 0 : index
    %c0_0 = arith.constant 0 : index
    %0 = vector.load %arg1[%c0, %c0_0] : memref<256x36xbf16, #tpu.memory_space<vmem>>, vector<256x36xbf16>
    %c0_1 = arith.constant 0 : index
    %c0_2 = arith.constant 0 : index
    %1 = vector.load %arg2[%c0_1, %c0_2] : memref<36x128xbf16, #tpu.memory_space<vmem>>, vector<36x128xbf16>
    %cst = arith.constant dense<0.000000e+00> : vector<256x128xf32>
    %2 = tpu.matmul %0, %1, %cst {dimension_numbers = #tpu.dot_dimension_numbers<[1], [0], [0], [1], [0, 0, 1, 1], [], []>} : vector<256x36xbf16>, vector<36x128xbf16>, vector<256x128xf32> -> vector<256x128xf32>
    %c0_3 = arith.constant 0 : index
    %c0_4 = arith.constant 0 : index
    %3 = vector.load %arg3[%c0_3, %c0_4] : memref<1x128xf32, #tpu.memory_space<vmem>>, vector<1x128xf32>
    %4 = vector.broadcast %3 : vector<1x128xf32> to vector<256x128xf32>
    %5 = arith.addf %2, %4 : vector<256x128xf32>
    %cst_5 = arith.constant 2.000000e-01 : f32
    %6 = vector.broadcast %cst_5 : f32 to vector<256x128xf32>
    %7 = arith.mulf %6, %5 : vector<256x128xf32>
    %8 = arith.maximumf %5, %7 : vector<256x128xf32>
    %9 = arith.mulf %8, %8 : vector<256x128xf32>
    %cst_6 = arith.constant dense<0.000000e+00> : vector<256xf32>
    %10 = vector.multi_reduction <add>, %9, %cst_6 [1] : vector<256x128xf32> to vector<256xf32>
    %11 = vector.shape_cast %10 : vector<256xf32> to vector<256x1xf32>
    %cst_7 = arith.constant 1.250000e-01 : f32
    %12 = vector.broadcast %cst_7 : f32 to vector<256x1xf32>
    %13 = arith.mulf %11, %12 : vector<256x1xf32>
    %cst_8 = arith.constant 9.99999993E-9 : f32
    %14 = vector.broadcast %cst_8 : f32 to vector<256x1xf32>
    %15 = arith.addf %13, %14 : vector<256x1xf32>
    %16 = math.rsqrt %15 : vector<256x1xf32>
    %17 = vector.broadcast %16 : vector<256x1xf32> to vector<256x128xf32>
    %18 = arith.mulf %8, %17 : vector<256x128xf32>
    %c0_9 = arith.constant 0 : index
    %c0_10 = arith.constant 0 : index
    %19 = vector.load %arg4[%c0_9, %c0_10] : memref<256x128xf32, #tpu.memory_space<vmem>>, vector<256x128xf32>
    tpu.vector_store %arg4[%c0_9, %c0_10], %18 {strides = array<i32>} : memref<256x128xf32, #tpu.memory_space<vmem>>, vector<256x128xf32>,
    return
  }
  func.func @transform_0(%arg0: i32) -> (i32, i32) {
    %c0_i32 = arith.constant 0 : i32
    %c0_i32_0 = arith.constant 0 : i32
    return %arg0, %c0_i32 : i32, i32
  }
  func.func @transform_1(%arg0: i32) -> (i32, i32) {
    %c0_i32 = arith.constant 0 : i32
    %c0_i32_0 = arith.constant 0 : i32
    %c0_i32_1 = arith.constant 0 : i32
    return %c0_i32, %c0_i32_0 : i32, i32
  }
  func.func @transform_2(%arg0: i32) -> (i32, i32) {
    %c0_i32 = arith.constant 0 : i32
    %c0_i32_0 = arith.constant 0 : i32
    %c0_i32_1 = arith.constant 0 : i32
    return %c0_i32, %c0_i32_0 : i32, i32
  }
  func.func @transform_3(%arg0: i32) -> (i32, i32) {
    %c0_i32 = arith.constant 0 : i32
    %c0_i32_0 = arith.constant 0 : i32
    return %arg0, %c0_i32 : i32, i32
  }
}

</mosaic_0001>

<bundles_post_ra>
// kernel: deconv_forward.1
= control target key start
LH: loop header
LB: loop body
LE: loop exit
PB: predicated region body
PF: predicated region fallthrough
CT: control target
= control target key end

     0   :  { %s1135_s12 = smov 0   ;;  %s1442_s0 = inlined_call_operand.vmem [shape: bf16[512,36], index: 0, kind: input, shape index: {}]   ;;  %s1443_s1 = inlined_call_operand.vmem [shape: bf16[36,128], index: 1, kind: input, shape index: {}]   ;;  %s1444_s2 = inlined_call_operand.vmem [shape: f32[1,128], index: 2, kind: input, shape index: {}]   ;;  %s1445_s3 = inlined_call_operand.vmem [shape: f32[512,128], index: 3, kind: output, shape index: {}]  }
   0x1 LB: > { %s904_s13 = sadd.s32 4294967295, %s1113_s12   ;;  %p908_p0 = scmp.ge.s32.totalorder %s1113_s12, 1  ;;  %s1113_s12 = sphi %s1135_s12, %s13_s12  }
   0x2   : > { %p138_p1 = scmp.lt.s32.totalorder %s1113_s12, 3 }
   0x4   : > { %p139_p2 = pnand %p908_p0, %p138_p1 }
   0x5   : > { %v1024_v0 = vld [vmem:[%s1443_s1] sm:$0xff] (!%p139_p2)   ;;  %v1025_v1 = vld [vmem:[%s1443_s1 + $0x8] sm:$0xff] (!%p139_p2)   ;;  %s909_s18 = sshll.u32 (!%p139_p2), %s904_s13, 5  ;;  %v1026_v2 = vld [vmem:[%s1443_s1 + $0x10] ss:$0 sps:$4 sm:$0x33] (!%p139_p2)  }
   0x6   : > { %142 = sbr.rel (%p139_p2) target bundleno = 459 (0x1cb), region = 32  ;;  %970 = vmatprep.subr.bf16.mxu0 (!%p139_p2), %v1024_v0  ;;  %1008 = vmatprep.subr.bf16.mxu1 (!%p139_p2), %v1024_v0  ;;  %p163_p3 = scmp.lt.s32.totalorder (!%p139_p2), %s909_s18, 63  ;;  %vm363_vm0 = vcmask (!%p139_p2), 1041408   ;;  %vm314_vm1 = vcmask (!%p139_p2), 293888   ;;  %v1195_v20 = vld [vmem:[%s1444_s2] ss:$0 sm:$0xff] (!%p139_p2) }
   0x7   : > { %971 = vmatpush3.bf16.msra.mxu0 (!%p139_p2), %v1024_v0  ;;  %1011 = vmatpush3.bf16.msra.mxu1 (!%p139_p2), %v1024_v0  ;;  %v365_v3 = vsel (!%p139_p2), %vm363_vm0, %v1026_v2, 0 }
   0x8   : > { %972 = vmatprep.subr.bf16.mxu0 (!%p139_p2), %v1025_v1  ;;  %1009 = vmatprep.subr.bf16.mxu1 (!%p139_p2), %v1025_v1 }
   0xb   : > { %973 = vmatpush3.bf16.msra.mxu0 (!%p139_p2), %v1025_v1  ;;  %1012 = vmatpush3.bf16.msra.mxu1 (!%p139_p2), %v1025_v1 }
   0xc   : > { %1014 = vmatprep.subr.msk.bf16.mxu0 (!%p139_p2), %vm363_vm0, %v1026_v2  ;;  %1015 = vmatprep.subr.msk.bf16.mxu1 (!%p139_p2), %vm363_vm0, %v1026_v2 }
   0xd   : > { %s1447_s18 = smov (!%p163_p3, %s909_s18), 63 }
   0xe   : > { %s910_s21 = sshll.u32 %s1447_s18, 2  ;;  %s912_s27 = sshll.u32 %s1447_s18, 3 }
   0xf   : > { %s1158_s24 = scalar_lea.vmem %s1442_s0, %s910_s21  ;;  %975 = vmatpush3.bf16.msra.mxu0 %v365_v3  ;;  %1013 = vmatpush3.bf16.msra.mxu1 %v365_v3  ;;  %s1373_s30 = scalar_lea.vmem %s1445_s3, %s912_s27 }
  0x10   : > { %v1027_v4 = vld [vmem:[%s1158_s24] sm:$0xff]   ;;  %v1029_v6 = vld [vmem:[%s1158_s24 + $0x8] sm:$0xff]   ;;  %v1031_v8 = vld [vmem:[%s1158_s24 + $0x10] sm:$0xff]  }
  0x11   : > { %v1028_v5 = vld [vmem:[%s1158_s24 + $0x40] sm:$0xff]   ;;  %976 = vmatprep.mubr.msk.bf16.mxu0 %vm314_vm1, %v1027_v4  ;;  %v1030_v7 = vld [vmem:[%s1158_s24 + $0x48] sm:$0xff]   ;;  %v1033_v9 = vld [vmem:[%s1158_s24 + $0x50] sm:$0xff]  }
  0x12   : > { %992 = vmatprep.mubr.msk.bf16.mxu1 %vm314_vm1, %v1028_v5  ;;  %977 = vmatmul.mubr.msk.bf16.vlgmr.msra.gmra.mrb[0].mxu0 %vm314_vm1, %v1029_v6  ;;  %v1032_v10 = vld [vmem:[%s1158_s24 + $0x18] sm:$0xff]   ;;  %v1035_v12 = vld [vmem:[%s1158_s24 + $0x20] sm:$0xff]   ;;  %v1036_v14 = vld [vmem:[%s1158_s24 + $0x28] sm:$0xff]  }
  0x13   : > { %993 = vmatmul.mubr.msk.bf16.vlgmr.msra.gmra.mrb[0].mxu1 %vm314_vm1, %v1030_v7  ;;  %980 = vmatprep.mubr.msk.bf16.mxu0 %vm314_vm1, %v1031_v8  ;;  %v1034_v11 = vld [vmem:[%s1158_s24 + $0x58] sm:$0xff]   ;;  %v1037_v13 = vld [vmem:[%s1158_s24 + $0x60] sm:$0xff]   ;;  %v1038_v15 = vld [vmem:[%s1158_s24 + $0x68] sm:$0xff]  }
  0x14   : > { %996 = vmatprep.mubr.msk.bf16.mxu1 %vm314_vm1, %v1033_v9  ;;  %v1039_v16 = vld [vmem:[%s1158_s24 + $0x30] sm:$0xff]   ;;  %v1040_v18 = vld [vmem:[%s1158_s24 + $0x38] sm:$0xff]  }
  0x15   : > { %v1041_v17 = vld [vmem:[%s1158_s24 + $0x70] sm:$0xff]   ;;  %v1042_v19 = vld [vmem:[%s1158_s24 + $0x78] sm:$0xff]  }
  0x1a   : > { %981 = vmatmul.mubr.msk.bf16.gmra.mrb[4].mxu0 %vm314_vm1, %v1032_v10 }
  0x1b   : > { %997 = vmatmul.mubr.msk.bf16.gmra.mrb[4].mxu1 %vm314_vm1, %v1034_v11  ;;  %984 = vmatprep.mubr.msk.bf16.mxu0 %vm314_vm1, %v1035_v12 }
  0x1c   : > { %1000 = vmatprep.mubr.msk.bf16.mxu1 %vm314_vm1, %v1037_v13 }
  0x22   : > { %985 = vmatmul.mubr.msk.bf16.gmra.mrb[8].mxu0 %vm314_vm1, %v1036_v14 }
  0x23   : > { %1001 = vmatmul.mubr.msk.bf16.gmra.mrb[8].mxu1 %vm314_vm1, %v1038_v15  ;;  %988 = vmatprep.mubr.msk.bf16.mxu0 %vm314_vm1, %v1039_v16 }
  0x24   : > { %1004 = vmatprep.mubr.msk.bf16.mxu1 %vm314_vm1, %v1041_v17 }
  0x2a   : > { %989 = vmatmul.mubr.msk.bf16.gmra.mrb[12].mxu0 %vm314_vm1, %v1040_v18 }
  0x2b   : > { %1005 = vmatmul.mubr.msk.bf16.gmra.mrb[12].mxu1 %vm314_vm1, %v1042_v19 }
  0xe5   : > { %v978_v21 = vpop.f32.mrb[0].mxu0 }
  0xe6   : > { %v994_v22 = vpop.f32.mrb[0].mxu1  ;;  %v410_v23 = vadd.f32 %v978_v21, %v1195_v20  ;;  %v401_v25 = vpop.f32.mrb[1].mxu0 }
  0xe7   : > { %v474_v24 = vadd.f32 %v994_v22, %v1195_v20  ;;  %v465_v26 = vpop.f32.mrb[1].mxu1  ;;  %v402_v27 = vadd.f32 %v1195_v20, %v401_v25  ;;  %v979_v29 = vpop.f32.mrb[2].mxu0 }
  0xe8   : > { %v466_v28 = vadd.f32 %v1195_v20, %v465_v26  ;;  %v995_v30 = vpop.f32.mrb[2].mxu1  ;;  %v530_v31 = vmul.f32 0.2, %v410_v23  ;;  %v413_v33 = vadd.f32 %v979_v29, %v1195_v20  ;;  %v404_v35 = vpop.f32.mrb[3].mxu0 }
  0xe9   : > { %v546_v32 = vmul.f32 0.2, %v474_v24  ;;  %v477_v34 = vadd.f32 %v995_v30, %v1195_v20  ;;  %v468_v36 = vpop.f32.mrb[3].mxu1  ;;  %v528_v37 = vmul.f32 0.2, %v402_v27  ;;  %v405_v43 = vadd.f32 %v1195_v20, %v404_v35 }
  0xea   : > { %v531_v38 = vmul.f32 0.2, %v413_v33  ;;  %v1205_v40 = vmax.f32 %v410_v23, %v530_v31  ;;  %v544_v41 = vmul.f32 0.2, %v466_v28  ;;  %v469_v44 = vadd.f32 %v1195_v20, %v468_v36 }
  0xeb   : > { %v1203_v39 = vmax.f32 %v474_v24, %v546_v32  ;;  %v547_v42 = vmul.f32 0.2, %v477_v34  ;;  %v1209_v45 = vmax.f32 %v402_v27, %v528_v37  ;;  %v529_v55 = vmul.f32 0.2, %v405_v43 }
  0xec   : > { %v1211_v46 = vmax.f32 %v413_v33, %v531_v38  ;;  %v594_v48 = vmul.f32 %v1205_v40, %v1205_v40  ;;  %v1217_v53 = vmax.f32 %v466_v28, %v544_v41  ;;  %v545_v56 = vmul.f32 0.2, %v469_v44 }
  0xed   : > { %v610_v47 = vmul.f32 %v1203_v39, %v1203_v39  ;;  %v982_v49 = vpop.f32.mrb[4].mxu0  ;;  %v1219_v54 = vmax.f32 %v477_v34, %v547_v42  ;;  %v592_v63 = vmul.f32 %v1209_v45, %v1209_v45  ;;  %v1227_v1 = vmax.f32 %v405_v43, %v529_v55 }
  0xee   : > { %v998_v50 = vpop.f32.mrb[4].mxu1  ;;  %628 = vadd.xlane.f32.xlu1 %v594_v48  ;;  %v417_v51 = vpop.f32.mrb[5].mxu0  ;;  %v426_v59 = vadd.f32 %v982_v49, %v1195_v20  ;;  %v595_v62 = vmul.f32 %v1211_v46, %v1211_v46  ;;  %v1229_v2 = vmax.f32 %v469_v44, %v545_v56  ;;  %v608_v4 = vmul.f32 %v1217_v53, %v1217_v53 }
  0xef   : > { %660 = vadd.xlane.f32.xlu0 %v610_v47  ;;  %v481_v52 = vpop.f32.mrb[5].mxu1  ;;  %v983_v57 = vpop.f32.mrb[6].mxu0  ;;  %v490_v3 = vadd.f32 %v998_v50, %v1195_v20  ;;  %v611_v8 = vmul.f32 %v1219_v54, %v1219_v54  ;;  %v418_v13 = vadd.f32 %v1195_v20, %v417_v51  ;;  %v593_v23 = vmul.f32 %v1227_v1, %v1227_v1 }
  0xf0   : > { %v999_v58 = vpop.f32.mrb[6].mxu1  ;;  %v429_v60 = vadd.f32 %v983_v57, %v1195_v20  ;;  %v420_v61 = vpop.f32.mrb[7].mxu0  ;;  %v534_v5 = vmul.f32 0.2, %v426_v59  ;;  %v609_v16 = vmul.f32 %v1229_v2, %v1229_v2  ;;  %v482_v28 = vadd.f32 %v1195_v20, %v481_v52 }
  0xf1   : > { %v484_v0 = vpop.f32.mrb[7].mxu1  ;;  %v493_v7 = vadd.f32 %v999_v58, %v1195_v20  ;;  %v421_v14 = vadd.f32 %v1195_v20, %v420_v61  ;;  %v550_v15 = vmul.f32 0.2, %v490_v3  ;;  %v532_v26 = vmul.f32 0.2, %v418_v13 }
  0xf2   : > { %630 = vadd.xlane.f32.xlu1 %v595_v62  ;;  %v535_v6 = vmul.f32 0.2, %v429_v60  ;;  %v1243_v19 = vmax.f32 %v426_v59, %v534_v5  ;;  %v485_v29 = vadd.f32 %v1195_v20, %v484_v0  ;;  %v548_v41 = vmul.f32 0.2, %v482_v28 }
  0xf3   : > { %624 = vadd.xlane.f32.xlu0 %v592_v63  ;;  %v551_v22 = vmul.f32 0.2, %v493_v7  ;;  %v1249_v27 = vmax.f32 %v490_v3, %v550_v15  ;;  %v533_v30 = vmul.f32 0.2, %v421_v14  ;;  %v1263_v38 = vmax.f32 %v418_v13, %v532_v26 }
  0xf4   : > { %v1245_v21 = vmax.f32 %v429_v60, %v535_v6  ;;  %v598_v33 = vmul.f32 %v1243_v19, %v1243_v19  ;;  %v549_v42 = vmul.f32 0.2, %v485_v29  ;;  %v1275_v56 = vmax.f32 %v482_v28, %v548_v41 }
  0xf5   : > { %v986_v9 = vpop.f32.mrb[8].mxu0  ;;  %v1253_v31 = vmax.f32 %v493_v7, %v551_v22  ;;  %v1268_v48 = vmax.f32 %v421_v14, %v533_v30  ;;  %v614_v51 = vmul.f32 %v1249_v27, %v1249_v27  ;;  %v596_v63 = vmul.f32 %v1263_v38, %v1263_v38 }
  0xf6   : > { %v1002_v10 = vpop.f32.mrb[8].mxu1  ;;  %662 = vadd.xlane.f32.xlu1 %v611_v8  ;;  %v433_v11 = vpop.f32.mrb[9].mxu0  ;;  %v599_v32 = vmul.f32 %v1245_v21, %v1245_v21  ;;  %v442_v43 = vadd.f32 %v986_v9, %v1195_v20  ;;  %v1277_v57 = vmax.f32 %v485_v29, %v549_v42  ;;  %v612_v9 = vmul.f32 %v1275_v56, %v1275_v56 }
  0xf7   : > { %656 = vadd.xlane.f32.xlu0 %v608_v4  ;;  %v1237_v12 = vpop.f32.mrb[9].mxu1  ;;  %v987_v17 = vpop.f32.mrb[10].mxu0  ;;  %v615_v50 = vmul.f32 %v1253_v31, %v1253_v31  ;;  %v506_v59 = vadd.f32 %v1002_v10, %v1195_v20  ;;  %v597_v62 = vmul.f32 %v1268_v48, %v1268_v48  ;;  %v434_v3 = vadd.f32 %v1195_v20, %v433_v11 }
  0xf8   : > { %v1003_v18 = vpop.f32.mrb[10].mxu1  ;;  %v436_v24 = vpop.f32.mrb[11].mxu0  ;;  %v445_v49 = vadd.f32 %v987_v17, %v1195_v20  ;;  %v538_v58 = vmul.f32 0.2, %v442_v43  ;;  %v613_v8 = vmul.f32 %v1277_v57, %v1277_v57  ;;  %v498_v11 = vadd.f32 %v1195_v20, %v1237_v12 }
  0xf9   : > { %v500_v25 = vpop.f32.mrb[11].mxu1  ;;  %v509_v61 = vadd.f32 %v1003_v18, %v1195_v20  ;;  %v437_v4 = vadd.f32 %v1195_v20, %v436_v24  ;;  %v554_v5 = vmul.f32 0.2, %v506_v59  ;;  %v536_v10 = vmul.f32 0.2, %v434_v3 }
  0xfa   : > { %658 = vadd.xlane.f32.xlu1 %v609_v16  ;;  %v539_v60 = vmul.f32 0.2, %v445_v49  ;;  %v1285_v0 = vmax.f32 %v442_v43, %v538_v58  ;;  %v501_v14 = vadd.f32 %v1195_v20, %v500_v25 }
  0xfb   : > { %626 = vadd.xlane.f32.xlu0 %v593_v23  ;;  %v555_v7 = vmul.f32 0.2, %v509_v61  ;;  %v1295_v13 = vmax.f32 %v506_v59, %v554_v5  ;;  %v537_v15 = vmul.f32 0.2, %v437_v4  ;;  %v1306_v22 = vmax.f32 %v434_v3, %v536_v10 }
  0xfc   : > { %v1289_v6 = vmax.f32 %v445_v49, %v539_v60  ;;  %v602_v18 = vmul.f32 %v1285_v0, %v1285_v0  ;;  %v552_v23 = vmul.f32 0.2, %v498_v11  ;;  %v553_v24 = vmul.f32 0.2, %v501_v14 }
  0xfd   : > { %v990_v34 = vpop.f32.mrb[12].mxu0  ;;  %v1300_v16 = vmax.f32 %v509_v61, %v555_v7  ;;  %v1309_v12 = vmax.f32 %v437_v4, %v537_v15  ;;  %v618_v29 = vmul.f32 %v1295_v13, %v1295_v13 }
  0xfe   : > { %v1259_v35 = vpop.f32.mrb[12].mxu1  ;;  %638 = vadd.xlane.f32.xlu1 %v599_v32  ;;  %v449_v36 = vpop.f32.mrb[13].mxu0  ;;  %v603_v17 = vmul.f32 %v1289_v6, %v1289_v6  ;;  %v458_v26 = vadd.f32 %v990_v34, %v1195_v20  ;;  %v1316_v30 = vmax.f32 %v498_v11, %v552_v23  ;;  %v1318_v32 = vmax.f32 %v501_v14, %v553_v24 }
  0xff   : > { %636 = vadd.xlane.f32.xlu0 %v598_v33  ;;  %v1261_v37 = vpop.f32.mrb[13].mxu1  ;;  %v991_v44 = vpop.f32.mrb[14].mxu0  ;;  %v619_v28 = vmul.f32 %v1300_v16, %v1300_v16  ;;  %v450_v41 = vadd.f32 %v1195_v20, %v449_v36  ;;  %v601_v43 = vmul.f32 %v1309_v12, %v1309_v12 }
 0x100   : > { %v1266_v47 = vpop.f32.mrb[14].mxu1  ;;  %v452_v52 = vpop.f32.mrb[15].mxu0  ;;  %v461_v25 = vadd.f32 %v991_v44, %v1195_v20  ;;  %v542_v33 = vmul.f32 0.2, %v458_v26  ;;  %v600_v44 = vmul.f32 %v1306_v22, %v1306_v22  ;;  %v616_v60 = vmul.f32 %v1316_v30, %v1316_v30 }
 0x101   : > { %v516_v55 = vpop.f32.mrb[15].mxu1  ;;  %v453_v42 = vadd.f32 %v1195_v20, %v452_v52  ;;  %v617_v52 = vmul.f32 %v1318_v32, %v1318_v32 }
 0x102   : > { %670 = vadd.xlane.f32.xlu1 %v615_v50  ;;  %v543_v34 = vmul.f32 0.2, %v461_v25  ;;  %v1326_v49 = vmax.f32 %v458_v26, %v542_v33  ;;  %v540_v50 = vmul.f32 0.2, %v450_v41  ;;  %v517_v58 = vadd.f32 %v1195_v20, %v516_v55 }
 0x103   : > { %668 = vadd.xlane.f32.xlu0 %v614_v51  ;;  %v514_v51 = vadd.f32 %v1195_v20, %v1261_v37  ;;  %v541_v59 = vmul.f32 0.2, %v453_v42  ;;  %v525_v37 = vadd.f32 %v1266_v47, %v1195_v20 }
 0x104   : > { %v1331_v36 = vmax.f32 %v461_v25, %v543_v34  ;;  %v1337_v61 = vmax.f32 %v450_v41, %v540_v50  ;;  %v557_v3 = vmul.f32 0.2, %v517_v58  ;;  %v606_v5 = vmul.f32 %v1326_v49, %v1326_v49 }
 0x105   : > { %v1343_v55 = vmax.f32 %v453_v42, %v541_v59 }
 0x106   : > { %634 = vadd.xlane.f32.xlu1 %v597_v62  ;;  %v522_v62 = vadd.f32 %v1259_v35, %v1195_v20  ;;  %v607_v4 = vmul.f32 %v1331_v36, %v1331_v36  ;;  %v1351_v35 = vmax.f32 %v517_v58, %v557_v3  ;;  %v604_v47 = vmul.f32 %v1337_v61, %v1337_v61 }
 0x107   : > { %632 = vadd.xlane.f32.xlu0 %v596_v63  ;;  %v556_v63 = vmul.f32 0.2, %v514_v51  ;;  %v605_v20 = vmul.f32 %v1343_v55, %v1343_v55 }
 0x108   : > { %v558_v7 = vmul.f32 0.2, %v522_v62  ;;  %v621_v14 = vmul.f32 %v1351_v35, %v1351_v35 }
 0x10a   : > { %666 = vadd.xlane.f32.xlu1 %v613_v8  ;;  %v559_v8 = vmul.f32 0.2, %v525_v37  ;;  %v1357_v10 = vmax.f32 %v522_v62, %v558_v7 }
 0x10b   : > { %664 = vadd.xlane.f32.xlu0 %v612_v9  ;;  %v1349_v9 = vmax.f32 %v514_v51, %v556_v63 }
 0x10c   : > { %v1359_v11 = vmax.f32 %v525_v37, %v559_v8 }
 0x10d   : > { %v620_v15 = vmul.f32 %v1349_v9, %v1349_v9 }
 0x10e   : > { %646 = vadd.xlane.f32.xlu1 %v603_v17  ;;  %v623_v17 = vmul.f32 %v1359_v11, %v1359_v11 }
 0x10f   : > { %644 = vadd.xlane.f32.xlu0 %v602_v18  ;;  %v622_v18 = vmul.f32 %v1357_v10, %v1357_v10 }
 0x112   : > { %678 = vadd.xlane.f32.xlu1 %v619_v28 }
 0x113   : > { %676 = vadd.xlane.f32.xlu0 %v618_v29 }
 0x116   : > { %642 = vadd.xlane.f32.xlu1 %v601_v43 }
 0x117   : > { %640 = vadd.xlane.f32.xlu0 %v600_v44 }
 0x11a   : > { %674 = vadd.xlane.f32.xlu1 %v617_v52 }
 0x11b   : > { %672 = vadd.xlane.f32.xlu0 %v616_v60 }
 0x11e   : > { %654 = vadd.xlane.f32.xlu1 %v607_v4 }
 0x11f   : > { %652 = vadd.xlane.f32.xlu0 %v606_v5 }
 0x122   : > { %650 = vadd.xlane.f32.xlu1 %v605_v20 }
 0x123   : > { %648 = vadd.xlane.f32.xlu0 %v604_v47 }
 0x126   : > { %682 = vadd.xlane.f32.xlu1 %v621_v14 }
 0x127   : > { %680 = vadd.xlane.f32.xlu0 %v620_v15 }
 0x12a   : > { %686 = vadd.xlane.f32.xlu1 %v623_v17 }
 0x12b   : > { %684 = vadd.xlane.f32.xlu0 %v622_v18 }
 0x17b   : > { %v629_v24 = vpop.xlane.xlu1 %628 }
 0x17c   : > { %v661_v23 = vpop.xlane.xlu0 %660  ;;  %v690_v25 = vmul.f32 0.125, %v629_v24 }
 0x17d   : > { %v706_v26 = vmul.f32 0.125, %v661_v23 }
 0x17e   : > { %v722_v29 = vadd.f32 1e-08, %v690_v25 }
 0x17f   : > { %v738_v28 = vadd.f32 1e-08, %v706_v26  ;;  %v631_v33 = vpop.xlane.xlu1 %630 }
 0x180   : > { %v625_v41 = vpop.xlane.xlu0 %624  ;;  %v691_v34 = vmul.f32 0.125, %v631_v33 }
 0x181   : > { %1043 = vrsqrt.f32 %v738_v28  ;;  %v688_v42 = vmul.f32 0.125, %v625_v41 }
 0x182   : > { %1045 = vrsqrt.f32 %v722_v29  ;;  %v723_v43 = vadd.f32 1e-08, %v691_v34 }
 0x183   : > { %v720_v44 = vadd.f32 1e-08, %v688_v42  ;;  %v663_v50 = vpop.xlane.xlu1 %662 }
 0x184   : > { %v657_v51 = vpop.xlane.xlu0 %656  ;;  %1047 = vrsqrt.f32 %v723_v43  ;;  %v707_v58 = vmul.f32 0.125, %v663_v50 }
 0x185   : > { %v704_v59 = vmul.f32 0.125, %v657_v51  ;;  %1049 = vrsqrt.f32 %v720_v44 }
 0x186   : > { %v739_v52 = vadd.f32 1e-08, %v707_v58 }
 0x187   : > { %v736_v60 = vadd.f32 1e-08, %v704_v59  ;;  %v659_v62 = vpop.xlane.xlu1 %658 }
 0x188   : > { %v627_v63 = vpop.xlane.xlu0 %626  ;;  %1051 = vrsqrt.f32 %v739_v52  ;;  %v705_v37 = vmul.f32 0.125, %v659_v62 }
 0x189   : > { %v689_v3 = vmul.f32 0.125, %v627_v63  ;;  %1053 = vrsqrt.f32 %v736_v60 }
 0x18a   : > { %v737_v5 = vadd.f32 1e-08, %v705_v37 }
 0x18b   : > { %v1044_v4 = vpop.eup %1043  ;;  %v721_v7 = vadd.f32 1e-08, %v689_v3  ;;  %v639_v47 = vpop.xlane.xlu1 %638 }
 0x18c   : > { %v1046_v8 = vpop.eup %1045  ;;  %v802_v20 = vmul.f32 %v1044_v4, %v1203_v39  ;;  %v637_v14 = vpop.xlane.xlu0 %636  ;;  %1055 = vrsqrt.f32 %v737_v5  ;;  %v695_v17 = vmul.f32 0.125, %v639_v47 }
 0x18d   : > { %v786_v15 = vmul.f32 %v1046_v8, %v1205_v40  ;;  %v694_v18 = vmul.f32 0.125, %v637_v14  ;;  %1057 = vrsqrt.f32 %v721_v7 }
 0x18e   : > { %834 = vst [vmem:[%s1373_s30 + $0x90] sm:$0xff] %v802_v20  ;;  %v1048_v23 = vpop.eup %1047  ;;  %v727_v24 = vadd.f32 1e-08, %v695_v17 }
 0x18f   : > { %818 = vst [vmem:[%s1373_s30 + $0x10] sm:$0xff] %v786_v15  ;;  %v726_v26 = vadd.f32 1e-08, %v694_v18  ;;  %v1050_v25 = vpop.eup %1049  ;;  %v787_v28 = vmul.f32 %v1048_v23, %v1211_v46  ;;  %v671_v29 = vpop.xlane.xlu1 %670 }
 0x190   : > { %v669_v39 = vpop.xlane.xlu0 %668  ;;  %v784_v33 = vmul.f32 %v1050_v25, %v1209_v45  ;;  %1059 = vrsqrt.f32 %v727_v24  ;;  %v711_v40 = vmul.f32 0.125, %v671_v29 }
 0x191   : > { %v710_v41 = vmul.f32 0.125, %v669_v39  ;;  %819 = vst [vmem:[%s1373_s30 + $0x18] sm:$0xff] %v787_v28  ;;  %1061 = vrsqrt.f32 %v726_v26 }
 0x192   : > { %v1052_v34 = vpop.eup %1051  ;;  %816 = vst [vmem:[%s1373_s30] sm:$0xff] %v784_v33  ;;  %v743_v42 = vadd.f32 1e-08, %v711_v40 }
 0x193   : > { %v742_v43 = vadd.f32 1e-08, %v710_v41  ;;  %v1054_v44 = vpop.eup %1053  ;;  %v803_v50 = vmul.f32 %v1052_v34, %v1219_v54  ;;  %v635_v51 = vpop.xlane.xlu1 %634 }
 0x194   : > { %v633_v46 = vpop.xlane.xlu0 %632  ;;  %v800_v58 = vmul.f32 %v1054_v44, %v1217_v53  ;;  %1063 = vrsqrt.f32 %v743_v42  ;;  %v693_v45 = vmul.f32 0.125, %v635_v51 }
 0x195   : > { %v692_v59 = vmul.f32 0.125, %v633_v46  ;;  %835 = vst [vmem:[%s1373_s30 + $0x98] sm:$0xff] %v803_v50  ;;  %1065 = vrsqrt.f32 %v742_v43 }
 0x196   : > { %v1056_v52 = vpop.eup %1055  ;;  %832 = vst [vmem:[%s1373_s30 + $0x80] sm:$0xff] %v800_v58  ;;  %v725_v60 = vadd.f32 1e-08, %v693_v45 }
 0x197   : > { %v724_v62 = vadd.f32 1e-08, %v692_v59  ;;  %v1058_v63 = vpop.eup %1057  ;;  %v801_v37 = vmul.f32 %v1056_v52, %v1229_v2  ;;  %v667_v3 = vpop.xlane.xlu1 %666 }
 0x198   : > { %v665_v54 = vpop.xlane.xlu0 %664  ;;  %v785_v4 = vmul.f32 %v1058_v63, %v1227_v1  ;;  %1067 = vrsqrt.f32 %v725_v60  ;;  %v709_v53 = vmul.f32 0.125, %v667_v3 }
 0x199   : > { %v708_v5 = vmul.f32 0.125, %v665_v54  ;;  %833 = vst [vmem:[%s1373_s30 + $0x88] sm:$0xff] %v801_v37  ;;  %1069 = vrsqrt.f32 %v724_v62 }
 0x19a   : > { %v1060_v7 = vpop.eup %1059  ;;  %817 = vst [vmem:[%s1373_s30 + $0x8] sm:$0xff] %v785_v4  ;;  %v741_v8 = vadd.f32 1e-08, %v709_v53 }
 0x19b   : > { %v740_v20 = vadd.f32 1e-08, %v708_v5  ;;  %v1062_v47 = vpop.eup %1061  ;;  %v791_v14 = vmul.f32 %v1060_v7, %v1245_v21  ;;  %v647_v15 = vpop.xlane.xlu1 %646 }
 0x19c   : > { %v645_v2 = vpop.xlane.xlu0 %644  ;;  %v790_v17 = vmul.f32 %v1062_v47, %v1243_v19  ;;  %1071 = vrsqrt.f32 %v741_v8  ;;  %v699_v1 = vmul.f32 0.125, %v647_v15 }
 0x19d   : > { %v698_v18 = vmul.f32 0.125, %v645_v2  ;;  %823 = vst [vmem:[%s1373_s30 + $0x38] sm:$0xff] %v791_v14  ;;  %1073 = vrsqrt.f32 %v740_v20 }
 0x19e   : > { %v1064_v23 = vpop.eup %1063  ;;  %822 = vst [vmem:[%s1373_s30 + $0x30] sm:$0xff] %v790_v17  ;;  %v731_v24 = vadd.f32 1e-08, %v699_v1 }
 0x19f   : > { %v730_v26 = vadd.f32 1e-08, %v698_v18  ;;  %v1066_v25 = vpop.eup %1065  ;;  %v807_v28 = vmul.f32 %v1064_v23, %v1253_v31  ;;  %v679_v29 = vpop.xlane.xlu1 %678 }
 0x1a0   : > { %v677_v21 = vpop.xlane.xlu0 %676  ;;  %v806_v39 = vmul.f32 %v1066_v25, %v1249_v27  ;;  %1075 = vrsqrt.f32 %v731_v24  ;;  %v715_v19 = vmul.f32 0.125, %v679_v29 }
 0x1a1   : > { %v714_v33 = vmul.f32 0.125, %v677_v21  ;;  %839 = vst [vmem:[%s1373_s30 + $0xb8] sm:$0xff] %v807_v28  ;;  %1077 = vrsqrt.f32 %v730_v26 }
 0x1a2   : > { %v1068_v40 = vpop.eup %1067  ;;  %838 = vst [vmem:[%s1373_s30 + $0xb0] sm:$0xff] %v806_v39  ;;  %v747_v41 = vadd.f32 1e-08, %v715_v19 }
 0x1a3   : > { %v746_v34 = vadd.f32 1e-08, %v714_v33  ;;  %v1070_v42 = vpop.eup %1069  ;;  %v789_v43 = vmul.f32 %v1068_v40, %v1268_v48  ;;  %v643_v44 = vpop.xlane.xlu1 %642 }
 0x1a4   : > { %v641_v31 = vpop.xlane.xlu0 %640  ;;  %v788_v50 = vmul.f32 %v1070_v42, %v1263_v38  ;;  %1079 = vrsqrt.f32 %v747_v41  ;;  %v697_v27 = vmul.f32 0.125, %v643_v44 }
 0x1a5   : > { %v696_v51 = vmul.f32 0.125, %v641_v31  ;;  %821 = vst [vmem:[%s1373_s30 + $0x28] sm:$0xff] %v789_v43  ;;  %1081 = vrsqrt.f32 %v746_v34 }
 0x1a6   : > { %v1072_v46 = vpop.eup %1071  ;;  %820 = vst [vmem:[%s1373_s30 + $0x20] sm:$0xff] %v788_v50  ;;  %v729_v58 = vadd.f32 1e-08, %v697_v27 }
 0x1a7   : > { %v728_v45 = vadd.f32 1e-08, %v696_v51  ;;  %v1074_v59 = vpop.eup %1073  ;;  %v805_v52 = vmul.f32 %v1072_v46, %v1277_v57  ;;  %v675_v60 = vpop.xlane.xlu1 %674 }
 0x1a8   : > { %v673_v48 = vpop.xlane.xlu0 %672  ;;  %v804_v62 = vmul.f32 %v1074_v59, %v1275_v56  ;;  %1083 = vrsqrt.f32 %v729_v58  ;;  %v713_v38 = vmul.f32 0.125, %v675_v60 }
 0x1a9   : > { %v712_v63 = vmul.f32 0.125, %v673_v48  ;;  %837 = vst [vmem:[%s1373_s30 + $0xa8] sm:$0xff] %v805_v52  ;;  %1085 = vrsqrt.f32 %v728_v45 }
 0x1aa   : > { %v1076_v37 = vpop.eup %1075  ;;  %836 = vst [vmem:[%s1373_s30 + $0xa0] sm:$0xff] %v804_v62  ;;  %v745_v3 = vadd.f32 1e-08, %v713_v38 }
 0x1ab   : > { %v744_v54 = vadd.f32 1e-08, %v712_v63  ;;  %v1078_v4 = vpop.eup %1077  ;;  %v795_v53 = vmul.f32 %v1076_v37, %v1289_v6  ;;  %v655_v5 = vpop.xlane.xlu1 %654 }
 0x1ac   : > { %v653_v57 = vpop.xlane.xlu0 %652  ;;  %v794_v7 = vmul.f32 %v1078_v4, %v1285_v0  ;;  %1087 = vrsqrt.f32 %v745_v3  ;;  %v703_v56 = vmul.f32 0.125, %v655_v5 }
 0x1ad   : > { %v702_v8 = vmul.f32 0.125, %v653_v57  ;;  %827 = vst [vmem:[%s1373_s30 + $0x58] sm:$0xff] %v795_v53  ;;  %1089 = vrsqrt.f32 %v744_v54 }
 0x1ae   : > { %v1080_v20 = vpop.eup %1079  ;;  %826 = vst [vmem:[%s1373_s30 + $0x50] sm:$0xff] %v794_v7  ;;  %v735_v47 = vadd.f32 1e-08, %v703_v56 }
 0x1af   : > { %v734_v14 = vadd.f32 1e-08, %v702_v8  ;;  %v1082_v15 = vpop.eup %1081  ;;  %v811_v2 = vmul.f32 %v1080_v20, %v1300_v16  ;;  %v651_v17 = vpop.xlane.xlu1 %650 }
 0x1b0   : > { %v649_v6 = vpop.xlane.xlu0 %648  ;;  %v810_v1 = vmul.f32 %v1082_v15, %v1295_v13  ;;  %1091 = vrsqrt.f32 %v735_v47  ;;  %v701_v0 = vmul.f32 0.125, %v651_v17 }
 0x1b1   : > { %v700_v18 = vmul.f32 0.125, %v649_v6  ;;  %843 = vst [vmem:[%s1373_s30 + $0xd8] sm:$0xff] %v811_v2  ;;  %1093 = vrsqrt.f32 %v734_v14 }
 0x1b2   : > { %v1084_v23 = vpop.eup %1083  ;;  %842 = vst [vmem:[%s1373_s30 + $0xd0] sm:$0xff] %v810_v1  ;;  %v733_v24 = vadd.f32 1e-08, %v701_v0 }
 0x1b3   : > { %v732_v26 = vadd.f32 1e-08, %v700_v18  ;;  %v1086_v25 = vpop.eup %1085  ;;  %v793_v28 = vmul.f32 %v1084_v23, %v1309_v12  ;;  %v683_v29 = vpop.xlane.xlu1 %682 }
 0x1b4   : > { %v681_v16 = vpop.xlane.xlu0 %680  ;;  %v792_v21 = vmul.f32 %v1086_v25, %v1306_v22  ;;  %1095 = vrsqrt.f32 %v733_v24  ;;  %v717_v13 = vmul.f32 0.125, %v683_v29 }
 0x1b5   : > { %v716_v39 = vmul.f32 0.125, %v681_v16  ;;  %825 = vst [vmem:[%s1373_s30 + $0x48] sm:$0xff] %v793_v28  ;;  %1097 = vrsqrt.f32 %v732_v26 }
 0x1b6   : > { %v1088_v19 = vpop.eup %1087  ;;  %824 = vst [vmem:[%s1373_s30 + $0x40] sm:$0xff] %v792_v21  ;;  %v749_v33 = vadd.f32 1e-08, %v717_v13 }
 0x1b7   : > { %v748_v40 = vadd.f32 1e-08, %v716_v39  ;;  %v1090_v41 = vpop.eup %1089  ;;  %v809_v34 = vmul.f32 %v1088_v19, %v1318_v32  ;;  %v687_v42 = vpop.xlane.xlu1 %686 }
 0x1b8   : > { %v685_v12 = vpop.xlane.xlu0 %684  ;;  %v808_v43 = vmul.f32 %v1090_v41, %v1316_v30  ;;  %1099 = vrsqrt.f32 %v749_v33  ;;  %v719_v22 = vmul.f32 0.125, %v687_v42 }
 0x1b9   : > { %v718_v44 = vmul.f32 0.125, %v685_v12  ;;  %841 = vst [vmem:[%s1373_s30 + $0xc8] sm:$0xff] %v809_v34  ;;  %1101 = vrsqrt.f32 %v748_v40 }
 0x1ba   : > { %v1092_v31 = vpop.eup %1091  ;;  %840 = vst [vmem:[%s1373_s30 + $0xc0] sm:$0xff] %v808_v43  ;;  %v751_v50 = vadd.f32 1e-08, %v719_v22 }
 0x1bb   : > { %v750_v27 = vadd.f32 1e-08, %v718_v44  ;;  %v1094_v51 = vpop.eup %1093  ;;  %v799_v32 = vmul.f32 %v1092_v31, %v1331_v36 }
 0x1bc   : > { %v798_v46 = vmul.f32 %v1094_v51, %v1326_v49  ;;  %1103 = vrsqrt.f32 %v751_v50 }
 0x1bd   : > { %831 = vst [vmem:[%s1373_s30 + $0x78] sm:$0xff] %v799_v32  ;;  %1105 = vrsqrt.f32 %v750_v27 }
 0x1be   : > { %v1096_v30 = vpop.eup %1095  ;;  %830 = vst [vmem:[%s1373_s30 + $0x70] sm:$0xff] %v798_v46 }
 0x1bf   : > { %v1098_v58 = vpop.eup %1097  ;;  %v797_v45 = vmul.f32 %v1096_v30, %v1343_v55 }
 0x1c0   : > { %v796_v59 = vmul.f32 %v1098_v58, %v1337_v61 }
 0x1c1   : > { %829 = vst [vmem:[%s1373_s30 + $0x68] sm:$0xff] %v797_v45 }
 0x1c2   : > { %v1100_v52 = vpop.eup %1099  ;;  %828 = vst [vmem:[%s1373_s30 + $0x60] sm:$0xff] %v796_v59 }
 0x1c3   : > { %v1102_v36 = vpop.eup %1101  ;;  %v813_v60 = vmul.f32 %v1100_v52, %v1351_v35 }
 0x1c4   : > { %v812_v49 = vmul.f32 %v1102_v36, %v1349_v9 }
 0x1c5   : > { %845 = vst [vmem:[%s1373_s30 + $0xe8] sm:$0xff] %v813_v60 }
 0x1c6   : > { %v1104_v48 = vpop.eup %1103  ;;  %844 = vst [vmem:[%s1373_s30 + $0xe0] sm:$0xff] %v812_v49 }
 0x1c7   : > { %v1106_v62 = vpop.eup %1105  ;;  %v815_v38 = vmul.f32 %v1104_v48, %v1359_v11 }
 0x1c8   : > { %v814_v63 = vmul.f32 %v1106_v62, %v1357_v10 }
 0x1c9   : > { %847 = vst [vmem:[%s1373_s30 + $0xf8] sm:$0xff] %v815_v38 }
 0x1ca   : > { %846 = vst [vmem:[%s1373_s30 + $0xf0] sm:$0xff] %v814_v63 }
 0x1cb PF: > { %s13_s12 = sadd.s32 1, %s1113_s12  }
 0x1cc   : > { %p10_p4 = scmp.ge.s32.totalorder %s13_s12, 4  }
 0x1ce   :  { %12 = sbr.rel (!%p10_p4) target bundleno = 1 (0x1), region = 62 }

</bundles_post_ra>
